<compile_context>
chip_gen: v7x
topology: tpu7x:2x2x1
jax: 0.10.0
libtpu: 0.0.40
codegen_flags: <defaults>
</compile_context>

<pallas_src>
import jax
import jax.numpy as jnp
from jax.experimental import pallas as pl
from jax.experimental.pallas import tpu as pltpu

_THRESHOLD = 0.5
_LANES = 128
_TARGET_BLOCK_BYTES = 2 * 1024 * 1024  # ~2 MiB per block buffer


def _ternarize(x):
    thr = jnp.asarray(_THRESHOLD, dtype=x.dtype)
    return (x > thr).astype(x.dtype) - (x < -thr).astype(x.dtype)


def _ter_act_kernel(x_ref, o_ref):
    # 2 compares + 2 casts + 1 sub per vreg: pure VPU work, far below the
    # HBM roofline — all the cost is the streaming DMA.
    o_ref[...] = _ternarize(x_ref[...])


def _sublane_multiple(dtype) -> int:
    # Sub-32-bit dtypes pack along sublanes: 8 rows for 4-byte, 16 for 2-byte,
    # 32 for 1-byte elements.
    return max(8, 32 // jnp.dtype(dtype).itemsize)


def _round_up(a: int, m: int) -> int:
    return ((a + m - 1) // m) * m


def symm_ter_active(x: jax.Array, *, min_pallas_elems: int = 1024) -> jax.Array:
    """Elementwise symmetric ternary activation; same shape/dtype as x."""
    n = x.size
    itemsize = jnp.dtype(x.dtype).itemsize

    # Bypass: tiny tensors (launch overhead dominates) and sizes that are not a
    # multiple of 128 lanes (padding/slicing around a custom call would add
    # full-tensor HBM copies; the fused XLA elementwise expr is ~roofline).
    if n == 0 or n < min_pallas_elems or n % _LANES != 0:
        return _ternarize(x)

    rows = n // _LANES
    x2d = x.reshape(rows, _LANES)  # contiguous reshape: no HBM copy

    sub = _sublane_multiple(x.dtype)
    # Big fixed tile (~2 MiB) rounded to the sublane multiple.
    tile_rows = max(sub, (_TARGET_BLOCK_BYTES // (_LANES * itemsize)) // sub * sub)
    if rows > sub:
        # Keep >= 2 grid steps so the "parallel" axis can shard across both
        # TensorCores on v7x.
        tile_rows = min(tile_rows, _round_up(pl.cdiv(rows, 2), sub))
    tile_rows = min(tile_rows, _round_up(rows, sub))
    grid = (pl.cdiv(rows, tile_rows),)  # ragged tail masked by Pallas

    out2d = pl.pallas_call(
        _ter_act_kernel,
        out_shape=jax.ShapeDtypeStruct((rows, _LANES), x.dtype),
        grid_spec=pltpu.PrefetchScalarGridSpec(
            num_scalar_prefetch=0,
            grid=grid,
            in_specs=[pl.BlockSpec((tile_rows, _LANES), lambda i: (i, 0))],
            out_specs=pl.BlockSpec((tile_rows, _LANES), lambda i: (i, 0)),
        ),
        compiler_params=pltpu.CompilerParams(
            dimension_semantics=("parallel",)),
        cost_estimate=pl.CostEstimate(
            flops=3 * n, transcendentals=0, bytes_accessed=2 * n * itemsize),
    )(x2d)

    return out2d.reshape(x.shape)


if __name__ == "__main__":
    key = jax.random.PRNGKey(0)

    # Small NCHW activation (module's typical input); exercises the Pallas path
    # (2048 elements, 128-aligned -> 2-step grid with 8-row f32 blocks).
    x = jax.random.normal(key, (2, 4, 16, 16), dtype=jnp.float32)
    out = jax.block_until_ready(symm_ter_active(x))
    ref = _ternarize(x)
    assert out.shape == x.shape and out.dtype == x.dtype
    assert bool(jnp.all(out == ref))

    # Larger bf16 feature map: multi-step grid, partial (masked) last block,
    # and the 16-row sublane packing path.
    y = (jax.random.normal(jax.random.fold_in(key, 1),
                           (4, 24, 20, 20), dtype=jnp.float32) * 2.0
         ).astype(jnp.bfloat16)
    out_y = jax.block_until_ready(symm_ter_active(y))
    assert out_y.shape == y.shape and out_y.dtype == y.dtype
    assert bool(jnp.all(out_y == _ternarize(y)))

    # Ragged size (not a multiple of 128 elements) takes the fused-jnp fallback.
    z = jax.random.normal(jax.random.fold_in(key, 2), (3, 5, 7, 7),
                          dtype=jnp.float32)
    out_z = jax.block_until_ready(symm_ter_active(z))
    assert bool(jnp.all(out_z == _ternarize(z)))

    print("KERNEL_OK")
</pallas_src>

<mosaic_0001>
module attributes {stable_mosaic.version = 11 : i64} {
  func.func @_ter_act_kernel(%arg0: i32, %arg1: memref<8x128xf32, #tpu.memory_space<vmem>>, %arg2: memref<8x128xf32, #tpu.memory_space<vmem>>) attributes {dimension_semantics = [#tpu.dimension_semantics<parallel>], iteration_bounds = array<i64: 2>, scalar_prefetch = 0 : i64, scratch_operands = 0 : i64, tpu.core_type = #tpu.core_type<tc>, window_params = [{transform_indices = @transform_0, window_bounds = array<i64: 8, 128>}, {transform_indices = @transform_1, window_bounds = array<i64: 8, 128>}]} {
    %c0 = arith.constant 0 : index
    %c0_0 = arith.constant 0 : index
    %0 = vector.load %arg1[%c0, %c0_0] : memref<8x128xf32, #tpu.memory_space<vmem>>, vector<8x128xf32>
    %cst = arith.constant 5.000000e-01 : f32
    %1 = vector.broadcast %cst : f32 to vector<8x128xf32>
    %2 = arith.cmpf ogt, %0, %1 : vector<8x128xf32>
    %3 = arith.extui %2 : vector<8x128xi1> to vector<8x128xi32>
    %4 = arith.sitofp %3 : vector<8x128xi32> to vector<8x128xf32>
    %cst_1 = arith.constant 0.000000e+00 : f32
    %cst_2 = arith.constant 5.000000e-01 : f32
    %5 = arith.subf %cst_1, %cst_2 : f32
    %6 = vector.broadcast %5 : f32 to vector<8x128xf32>
    %7 = arith.cmpf olt, %0, %6 : vector<8x128xf32>
    %8 = arith.extui %7 : vector<8x128xi1> to vector<8x128xi32>
    %9 = arith.sitofp %8 : vector<8x128xi32> to vector<8x128xf32>
    %10 = arith.subf %4, %9 : vector<8x128xf32>
    %c0_3 = arith.constant 0 : index
    %c0_4 = arith.constant 0 : index
    %11 = vector.load %arg2[%c0_3, %c0_4] : memref<8x128xf32, #tpu.memory_space<vmem>>, vector<8x128xf32>
    tpu.vector_store %arg2[%c0_3, %c0_4], %10 {strides = array<i32>} : memref<8x128xf32, #tpu.memory_space<vmem>>, vector<8x128xf32>,
    return
  }
  func.func @transform_0(%arg0: i32) -> (i32, i32) {
    %c0_i32 = arith.constant 0 : i32
    %c0_i32_0 = arith.constant 0 : i32
    return %arg0, %c0_i32 : i32, i32
  }
  func.func @transform_1(%arg0: i32) -> (i32, i32) {
    %c0_i32 = arith.constant 0 : i32
    %c0_i32_0 = arith.constant 0 : i32
    return %arg0, %c0_i32 : i32, i32
  }
}

</mosaic_0001>

<bundles_post_ra>
// kernel: tpu_custom_call.1
= control target key start
LH: loop header
LB: loop body
LE: loop exit
PB: predicated region body
PF: predicated region fallthrough
CT: control target
= control target key end

     0   :  { %6 = vsyncpa [#allocation3], 0  ;;  %s558_s0 = inlined_call_operand.hbm [shape: f32[16,128], index: 0, kind: input, shape index: {}]   ;;  %s559_s1 = inlined_call_operand.hbm [shape: f32[16,128], index: 1, kind: output, shape index: {}]  }
   0x1   :  { %8 = vsyncpa [#allocation3 + $0x1], 0 }
   0x2   :  { %9 = vsyncpa [#allocation4], 0 }
   0x3   :  { %11 = vsyncpa [#allocation4 + $0x1], 0  ;;  %s397_s6 = smov 0   ;;  %s399_s7 = smov 0  }
   0x4   :  { %s401_s8 = smov 0   ;;  %s403_s9 = smov 0  }
   0x5 LB: > { %s418_s10 = sadd.s32 4294967295, %s382_s9   ;;  %s225_s11 = sadd.s32 4294967294, %s382_s9   ;;  %s382_s9 = sphi %s403_s9, %s574_s9   ;;  %s378_s8 = sphi %s401_s8, %s573_s8   ;;  %s374_s7 = sphi %s399_s7, %s572_s7   ;;  %s370_s6 = sphi %s397_s6, %s571_s6  }
   0x6   : > { %s422_s12 = sadd.s32 1, %s382_s9   ;;  %s24_s13 = sadd.s32 1, %s378_s8 }
   0x7   : > { %s21_s14 = ssub.s32 %s382_s9, %s422_s12  ;;  %p31_p0 = scmp.ne.s32.totalorder %s378_s8, %s374_s7 }
   0x8   : > { %p22_p1 = scmp.eq.s32.totalorder %s21_s14, 0  ;;  %p32_p2 = scmp.eq.s32.totalorder %s382_s9, 0 }
   0x9   : > { %p37_p3 = scmp.ne.s32.totalorder %s374_s7, %s370_s6  ;;  %p38_p4 = scmp.eq.s32.totalorder %s418_s10, 0 }
   0xa   : > { %s434_s15 = scalar_select %p22_p1, %s378_s8, %s24_s13  }
   0xb   : > { %p436_p5 = por %p32_p2, %p31_p0  ;;  %p440_p6 = por %p38_p4, %p37_p3 }
   0xc   : > { %p61_p7 = scmp.eq.s32.totalorder %s418_s10, 1  ;;  %p67_p8 = scmp.eq.s32.totalorder %s225_s11, 1 }
   0xd   : > { %p251_p10 = scmp.lt.s32.totalorder %s382_s9, 2  ;;  %s87_s20 = sand.u32 1, %s378_s8  }
   0xe   : > { %p447_p11 = por %p61_p7, %p31_p0  ;;  %p451_p12 = por %p67_p8, %p37_p3 }
   0xf   : > { %s229_s21 = sshll.u32 %s382_s9, 7  ;;  %s228_s22 = sshll.u32 %s87_s20, 3 }
  0x10   : > { %s563_s18 = scalar_select %p447_p11, 1, 0 }
  0x11   : > { %s564_s19 = scalar_select %p451_p12, 1, 0 }
  0x12   : > { %s460_s25 = scalar_lea.hbm %s558_s0, %s229_s21  ;;  %s91_s26 = scalar_lea.vmem [#allocation2], %s228_s22 }
  0x13   : > { %s98_s27 = sshll.u32 %s91_s26, 4  ;;  %p464_p13 = pnand %p251_p10, %p436_p5  ;;  %s468_s27 = int_to_ptr.vmem [resolvable:$true] %s98_s27 }
  0x14   : > { %s88_s29 = scalar_lea.sflag [#allocation3], %s87_s20  ;;  %s286_s30 = scalar_lea.hbm %s460_s25, 128 }
  0x15   : > { %p287_p2 = scmp.ne.s32.totalorder %s460_s25, %s286_s30  ;;  %p288_p3 = pneg %p464_p13 }
  0x16   : > { %s291_s4 = scalar_lea.hbm %s558_s0, 256  ;;  %p292_p5 = scmp.lt.u32.totalorder %s460_s25, %s558_s0 }
  0x17   : > { %p289_p4 = pnand %p288_p3, %p287_p2  ;;  %p293_p8 = scmp.lt.u32.totalorder %s291_s4, %s286_s30 }
  0x18   : > { %p295_p9 = scmp.lt.u32.totalorder %s286_s30, %s460_s25 }
  0x19   : > { %p290_p7 = pneg %p289_p4  ;;  %p294_p10 = por %p293_p8, %p292_p5 }
  0x1b   : > { %p296_p0 = por %p295_p9, %p294_p10 }
  0x1d   : > { %p297_p1 = pnand %p296_p0, %p290_p7 }
  0x1f   : > { %300 = shalt.err (!%p297_p1)
}
  0x20   : > { %s301_s13 = scalar_lea.vmem %s468_s27, 128  ;;  %s384_s14 = smov [#allocation2]  }
  0x21   : > { %p302_p2 = scmp.ne.s32.totalorder %s468_s27, %s301_s13  ;;  %s306_s16 = sshll.u32 %s384_s14, 4  ;;  %s307_s16 = int_to_ptr.vmem [resolvable:$false] %s306_s16 }
  0x22   : > { %s308_s20 = scalar_lea.vmem %s307_s16, 256  ;;  %p309_p11 = scmp.lt.s32.totalorder %s468_s27, %s307_s16 }
  0x23   : > { %p304_p4 = pnand %p302_p2, %p288_p3  ;;  %p310_p5 = scmp.lt.s32.totalorder %s308_s20, %s301_s13 }
  0x25   : > { %p305_p12 = pneg %p304_p4  ;;  %p311_p8 = por %p310_p5, %p309_p11 }
  0x27   : > { %p312_p9 = pnand %p311_p8, %p305_p12 }
  0x29   : > { %315 = shalt.err (!%p312_p9)
}
  0x2a   : > { %246 = dma.hbm_to_vmem [thread:$0]  (!%p464_p13), %s460_s25, 128, %s468_s27, %s88_s29  }
  0x2b   : > { %p566_p0 = scmp.lt.s32.totalorder %s382_s9, 3  ;;  %p567_p1 = scmp.ge.s32.totalorder %s382_s9, 1 }
  0x2d   : > { %p104_p3 = pnand %p567_p1, %p566_p0 }
  0x2e   : > { %s502_s21 = sand.u32 (!%p104_p3), 1, %s374_s7  }
  0x2f   : > { %107 = sbr.rel (%p104_p3) target bundleno = 81 (0x51), region = 24  ;;  %s231_s22 = sshll.u32 (!%p104_p3), %s502_s21, 3 }
  0x30   : > { %s110_s23 = scalar_lea.sflag (!%p104_p3), [#allocation3], %s502_s21  ;;  %s113_s24 = scalar_lea.vmem (!%p104_p3), [#allocation2], %s231_s22 }
  0x36   : > { %361 = dma.done.wait (%p440_p6), %s110_s23, 128  }
  0x37   : > { %363 = vsyncadd (%p440_p6), %s110_s23, 4294967168  ;;  %v132_v0 = vld [vmem:[%s113_s24] sm:$0xff]  ;;  %s131_s25 = scalar_lea.vmem [#allocation5], %s231_s22  ;;  %s236_s27 = sshll.u32 %s418_s10, 7  ;;  %v385_v1 = vmov 0.0  }
  0x38   : > { %s155_s26 = sshll.u32 %s131_s25, 4  ;;  %vm133_vm0 = vcmp.gt.f32.partialorder %v132_v0, 0.5  ;;  %vm136_vm1 = vcmp.lt.f32.partialorder %v132_v0, -0.5  ;;  %s516_s17 = scalar_lea.hbm %s559_s1, %s236_s27  ;;  %s511_s26 = int_to_ptr.vmem [resolvable:$true] %s155_s26 }
  0x39   : > { %v233_v2 = vsel %vm133_vm0, 1.0, %v385_v1  ;;  %v234_v3 = vsel %vm136_vm1, 1.0, %v385_v1  ;;  %s142_s30 = scalar_lea.sflag [#allocation4], %s502_s21  ;;  %s316_s2 = scalar_lea.vmem %s511_s26, 128 }
  0x3a   : > { %v139_v4 = vsub.f32 %v233_v2, %v234_v3  ;;  %p317_p6 = scmp.ne.s32.totalorder %s511_s26, %s316_s2  ;;  %p568_p11 = scmp.ne.s32.totalorder %s563_s18, 0 }
  0x3b   : > { %s386_s10 = smov [#allocation5]  }
  0x3c   : > { %140 = vst [vmem:[%s131_s25] sm:$0xff] %v139_v4  ;;  %p318_p12 = pnand %p317_p6, %p568_p11  ;;  %s320_s3 = sshll.u32 %s386_s10, 4  ;;  %s321_s3 = int_to_ptr.vmem [resolvable:$false] %s320_s3 }
  0x3d   : > { %s322_s4 = scalar_lea.vmem %s321_s3, 256  ;;  %p323_p7 = scmp.lt.s32.totalorder %s511_s26, %s321_s3 }
  0x3e   : > { %p319_p13 = pneg %p318_p12  ;;  %p324_p10 = scmp.lt.s32.totalorder %s322_s4, %s316_s2 }
  0x40   : > { %p325_p2 = por %p324_p10, %p323_p7 }
  0x42   : > { %p326_p4 = pnand %p325_p2, %p319_p13 }
  0x44   : > { %329 = shalt.err (!%p326_p4)
}
  0x45   : > { %s330_s5 = scalar_lea.hbm %s516_s17, 128  ;;  %s334_s14 = scalar_lea.hbm %s559_s1, 256 }
  0x46   : > { %p331_p5 = scmp.ne.s32.totalorder %s516_s17, %s330_s5  ;;  %p335_p0 = scmp.lt.u32.totalorder %s516_s17, %s559_s1 }
  0x47   : > { %p336_p1 = scmp.lt.u32.totalorder %s334_s14, %s330_s5  ;;  %p338_p6 = scmp.lt.u32.totalorder %s330_s5, %s516_s17 }
  0x48   : > { %p332_p8 = pnand %p331_p5, %p568_p11 }
  0x49   : > { %p337_p3 = por %p336_p1, %p335_p0 }
  0x4a   : > { %p333_p9 = pneg %p332_p8 }
  0x4b   : > { %p339_p12 = por %p338_p6, %p337_p3 }
  0x4d   : > { %p340_p13 = pnand %p339_p12, %p333_p9 }
  0x4f   : > { %343 = shalt.err (!%p340_p13)
}
  0x50   : > { %241 = dma.vmem_to_hbm [thread:$0]  (%p568_p11), %s511_s26, 128, %s516_s17, %s142_s30  }
  0x51 PF: > { %s167_s21 = sand.u32 1, %s370_s6   ;;  %p569_p7 = scmp.ne.s32.totalorder %s564_s19, 0 }
  0x52   : > { %p570_p10 = scmp.ge.s32.totalorder %s382_s9, 2  ;;  %s168_s22 = scalar_lea.sflag [#allocation4], %s167_s21 }
  0x54   : > { %p248_p2 = pnand %p570_p10, %p569_p7 }
  0x56   : > { %365 = dma.done.wait (!%p248_p2), %s168_s22, 128  }
  0x57   : > { %367 = vsyncadd (!%p248_p2), %s168_s22, 4294967168  ;;  %p14_p4 = scmp.ge.s32.totalorder %s422_s12, 4   ;;  %s571_s6 = smov %s374_s7 }
  0x58   : > { %s572_s7 = smov %s378_s8  ;;  %s573_s8 = smov %s434_s15 }
  0x59   : > { %s574_s9 = smov %s422_s12  ;;  %16 = sbr.rel (!%p14_p4) target bundleno = 5 (0x5), region = 69 }
  0x60   :  { %173 = vsyncpa [#allocation3], 1 }
  0x61   :  { %175 = vsyncpa [#allocation3 + $0x1], 1 }
  0x62   :  { %176 = vsyncpa [#allocation4], 1 }
  0x63   :  { %178 = vsyncpa [#allocation4 + $0x1], 1 }

</bundles_post_ra>
